<compile_context>
chip_gen: v5e
topology: v5e:2x2
jax: 0.10.0
libtpu: 0.0.40
codegen_flags: <defaults>
</compile_context>

<pallas_src>
import functools

import jax
import jax.numpy as jnp
from jax.experimental import pallas as pl
from jax.experimental.pallas import tpu as pltpu


def _flash_attn_kernel(xq_ref, th_ref, phi_ref, v_ref, o_ref, m_ref, acc_ref,
                       *, mxu_dtype, p_dtype, approx_reciprocal, out_channels):
    """One (batch, q-tile, kv-tile) grid step (flash-style online softmax).

    Layouts (channels/Ci on sublanes, positions lane-dense unless noted):
      xq_ref : (1, C,   tq)  x for the current q tile (residual only)
      th_ref : (1, Ci,  tq)  hoisted, scale-folded theta of the q tile
      phi_ref: (1, tk,  Ci)  hoisted phi of the kv tile (kv on sublanes)
      v_ref  : (1, C+1, tk)  hoisted value tile (w_W folded in); row C is ones
                             (zeros for padded keys)
      o_ref  : (1, C,   tq)  output tile (lane-dense stores)
      m_ref  : (1, tq)       running row max                       (f32)
      acc_ref: (C+1, tq)     un-normalized output; row C = denominator l (f32)
    """
    ki = pl.program_id(2)

    @pl.when(ki == 0)
    def _init():
        m_ref[...] = jnp.full(m_ref.shape, -1e30, dtype=jnp.float32)
        acc_ref[...] = jnp.zeros(acc_ref.shape, dtype=jnp.float32)

    # Scores with kv on sublanes, q on lanes: (tk, tq).  Plain NN matmul,
    # contraction over Ci; softmax_scale already folded into theta.
    s_t = jnp.dot(phi_ref[0], th_ref[0], preferred_element_type=jnp.float32)

    # Online softmax, normalization deferred to the last kv step.
    m_prev = m_ref[...]
    m_new = jnp.maximum(m_prev, jnp.max(s_t, axis=0, keepdims=True))    # (1, tq)
    alpha = jnp.exp(m_prev - m_new)                                     # (1, tq)
    p_t = jnp.exp((s_t - m_new).astype(p_dtype))                        # (tk, tq)

    # acc (C+1, tq) += V_aug (C+1, tk) @ P (tk, tq).  Row C of V_aug is ones
    # (zero on padded keys), so row C of acc carries the un-normalized softmax
    # denominator l -- no separate VPU row-sum pass over p_t.
    acc_ref[...] = alpha * acc_ref[...] + jnp.dot(
        v_ref[0], p_t.astype(mxu_dtype), preferred_element_type=jnp.float32)
    m_ref[...] = m_new

    @pl.when(ki == pl.num_programs(2) - 1)
    def _finalize():
        c = out_channels
        inv_l = pl.reciprocal(acc_ref[c:c + 1, :], approx=approx_reciprocal)
        # Folded output bias rides inside v, so dividing by l is exact.
        o_ref[0] = (acc_ref[0:c, :] * inv_l + xq_ref[0]).astype(o_ref.dtype)


def _round_up(x, m):
    return ((x + m - 1) // m) * m


def _pick_tile(n_pad, target):
    """Largest multiple of 128 that divides n_pad and is <= max(target, 128)."""
    target = max(int(target), 128)
    best = 128
    t = 128
    limit = min(n_pad, target)
    while t <= limit:
        if n_pad % t == 0:
            best = t
        t += 128
    return best


def contextual_attention_enhance(vid, params, *, softmax_scale=10.0,
                                 mxu_dtype=jnp.float32,
                                 p_dtype=None,
                                 approx_reciprocal=True,
                                 tq=512, tk=1024,
                                 vmem_limit_bytes=48 * 1024 * 1024):
    """vid: (B, C, H, W) NCHW float32.  Returns same shape/dtype.

    mxu_dtype=jnp.bfloat16: hoisted theta/phi/value streams are stored bf16 in
      HBM and fed to the MXU as bf16 (all softmax math stays fp32).
    p_dtype=jnp.bfloat16: compute the exp numerator in bf16 (v6e/v7x only --
      leave at the default fp32 on v5e, which has no bf16 VPU/EUP).
    approx_reciprocal=True: EUP approximate reciprocal for the softmax
      denominator (~1e-3 relative); set False for bit-tighter validation.
    """
    B, C, H, W = vid.shape
    N = H * W
    Ci = params["w_g"].shape[0]
    if p_dtype is None:
        p_dtype = jnp.float32

    # Channels-on-sublane layout: free reshape from NCHW (no transpose).
    x_cf = vid.reshape(B, C, N).astype(jnp.float32)                    # (B, C, N)

    # ---- wrapper-side algebraic folding ----
    scale = jnp.float32(softmax_scale)
    w_th = params["w_theta"].astype(jnp.float32) * scale               # (Ci, C)
    b_th = params["b_theta"].astype(jnp.float32) * scale               # (Ci,)
    w_v = params["w_W"].astype(jnp.float32) @ params["w_g"].astype(jnp.float32)
    b_v = (params["w_W"].astype(jnp.float32) @ params["b_g"].astype(jnp.float32)
           + params["b_W"].astype(jnp.float32))                        # (C,)

    # ---- hoisted projections (cheap O(N*C*Ci) XLA gemms vs O(N^2) attention) ----
    theta_cf = (jnp.einsum("oc,bcn->bon", w_th, x_cf)
                + b_th[None, :, None]).astype(mxu_dtype)               # (B, Ci, N)
    phi_nc = (jnp.einsum("oc,bcn->bno",
                         params["w_phi"].astype(jnp.float32), x_cf)
              + params["b_phi"].astype(jnp.float32)[None, None, :]
              ).astype(mxu_dtype)                                      # (B, N, Ci)
    v_cf = jnp.einsum("oc,bcn->bon", w_v, x_cf) + b_v[None, :, None]   # (B, C, N)
    v_aug = jnp.concatenate(
        [v_cf, jnp.ones((B, 1, N), jnp.float32)], axis=1).astype(mxu_dtype)

    # ---- lane/sublane-legal tiling + zero padding of the position axis ----
    n_pad = _round_up(N, 128)
    tq = _pick_tile(n_pad, tq)
    tk = _pick_tile(n_pad, tk)
    if n_pad != N:
        pad = n_pad - N
        x_cf = jnp.pad(x_cf, ((0, 0), (0, 0), (0, pad)))
        theta_cf = jnp.pad(theta_cf, ((0, 0), (0, 0), (0, pad)))
        # Zero padding also zeroes the ones-row for padded keys -> they
        # contribute exactly 0 to both numerator and denominator (no masking).
        v_aug = jnp.pad(v_aug, ((0, 0), (0, 0), (0, pad)))
        phi_nc = jnp.pad(phi_nc, ((0, 0), (0, pad), (0, 0)))

    grid = (B, n_pad // tq, n_pad // tk)

    kernel = functools.partial(_flash_attn_kernel, mxu_dtype=mxu_dtype,
                               p_dtype=p_dtype,
                               approx_reciprocal=approx_reciprocal,
                               out_channels=C)

    itemsize = jnp.dtype(mxu_dtype).itemsize
    flops = 2.0 * B * n_pad * n_pad * (Ci + C + 1)
    bytes_accessed = (B * (n_pad // tq) * n_pad * (Ci + C + 1) * itemsize
                      + B * n_pad * (Ci * itemsize + 2 * C * 4))
    cost = pl.CostEstimate(flops=int(flops),
                           transcendentals=int(B) * n_pad * n_pad,
                           bytes_accessed=int(bytes_accessed))

    out_cf = pl.pallas_call(
        kernel,
        out_shape=jax.ShapeDtypeStruct((B, C, n_pad), vid.dtype),
        grid_spec=pltpu.PrefetchScalarGridSpec(
            num_scalar_prefetch=0,
            grid=grid,
            in_specs=[
                pl.BlockSpec((1, C, tq), lambda b, qi, ki: (b, 0, qi)),      # x q tile
                pl.BlockSpec((1, Ci, tq), lambda b, qi, ki: (b, 0, qi)),     # theta q tile
                pl.BlockSpec((1, tk, Ci), lambda b, qi, ki: (b, ki, 0)),     # phi kv tile
                pl.BlockSpec((1, C + 1, tk), lambda b, qi, ki: (b, 0, ki)),  # value kv tile
            ],
            out_specs=pl.BlockSpec((1, C, tq), lambda b, qi, ki: (b, 0, qi)),
            scratch_shapes=[
                pltpu.VMEM((1, tq), jnp.float32),        # running max m
                pltpu.VMEM((C + 1, tq), jnp.float32),    # output acc + denominator l
            ]),
        compiler_params=pltpu.CompilerParams(
            dimension_semantics=("parallel", "parallel", "arbitrary"),
            vmem_limit_bytes=vmem_limit_bytes),
        cost_estimate=cost,
    )(x_cf, theta_cf, phi_nc, v_aug)

    # Drop kv/q padding; (B, C, N) -> NCHW is a free reshape (no transpose).
    return out_cf[:, :, :N].reshape(B, C, H, W)


def _reference(vid, params, softmax_scale=10.0):
    """Pure-JAX reference of the same forward (un-folded), for validation."""
    B, C, H, W = vid.shape
    N = H * W
    x = jnp.transpose(vid.reshape(B, C, N), (0, 2, 1)).astype(jnp.float32)
    g = x @ params["w_g"].T + params["b_g"]
    th = x @ params["w_theta"].T + params["b_theta"]
    ph = x @ params["w_phi"].T + params["b_phi"]
    s = jnp.einsum("bnc,bmc->bnm", th, ph) * softmax_scale
    p = jax.nn.softmax(s, axis=-1)
    y = jnp.einsum("bnm,bmc->bnc", p, g)
    y = y @ params["w_W"].T + params["b_W"] + x
    return jnp.transpose(y, (0, 2, 1)).reshape(B, C, H, W).astype(vid.dtype)


def init_params(key, in_channels, inter_channels):
    """Deterministic init of the 1x1 conv weights (g, theta, phi, W).

    Weights are stored PyTorch-style as (out, in) matrices plus (out,) biases.
    """
    ks = jax.random.split(key, 8)
    sc_in = 1.0 / jnp.sqrt(in_channels)
    sc_mid = 1.0 / jnp.sqrt(inter_channels)
    u = lambda k, shape, s: jax.random.uniform(k, shape, jnp.float32, -s, s)
    return {
        "w_g": u(ks[0], (inter_channels, in_channels), sc_in),
        "b_g": u(ks[1], (inter_channels,), sc_in),
        "w_theta": u(ks[2], (inter_channels, in_channels), sc_in),
        "b_theta": u(ks[3], (inter_channels,), sc_in),
        "w_phi": u(ks[4], (inter_channels, in_channels), sc_in),
        "b_phi": u(ks[5], (inter_channels,), sc_in),
        "w_W": u(ks[6], (in_channels, inter_channels), sc_mid),
        "b_W": u(ks[7], (in_channels,), sc_mid),
    }


if __name__ == "__main__":
    B, C, H, W = 2, 32, 16, 16       # small shapes; inter_channels = C // 4
    Ci = 8
    softmax_scale = 10.0

    key = jax.random.PRNGKey(0)
    k_x, k_p = jax.random.split(key)
    vid = jax.random.normal(k_x, (B, C, H, W), jnp.float32)
    params = init_params(k_p, C, Ci)

    ref = _reference(vid, params, softmax_scale=softmax_scale)

    # Exact fp32 path (exact reciprocal): must match the un-folded reference.
    out = contextual_attention_enhance(vid, params, softmax_scale=softmax_scale,
                                        approx_reciprocal=False)
    out = jax.block_until_ready(out)
    assert out.shape == (B, C, H, W)
    max_err = float(jnp.max(jnp.abs(out - ref)))
    assert jnp.allclose(out, ref, atol=1e-4, rtol=1e-4), max_err

    # bf16 MXU / bf16 HBM-stream fast path (all gens): loose smoke check.
    out_bf16 = contextual_attention_enhance(
        vid, params, softmax_scale=softmax_scale, mxu_dtype=jnp.bfloat16)
    out_bf16 = jax.block_until_ready(out_bf16)
    assert bool(jnp.all(jnp.isfinite(out_bf16)))
    mean_err = float(jnp.mean(jnp.abs(out_bf16 - ref)))
    assert mean_err < 0.25, mean_err

    print("KERNEL_OK")
</pallas_src>

<mosaic_0001>
module attributes {stable_mosaic.version = 11 : i64} {
  func.func @_flash_attn_kernel(%arg0: i32, %arg1: i32, %arg2: i32, %arg3: memref<1x32x256xf32, #tpu.memory_space<vmem>>, %arg4: memref<1x8x256xf32, #tpu.memory_space<vmem>>, %arg5: memref<1x256x8xf32, #tpu.memory_space<vmem>>, %arg6: memref<1x33x256xf32, #tpu.memory_space<vmem>>, %arg7: memref<1x32x256xf32, #tpu.memory_space<vmem>>, %arg8: memref<1x256xf32, #tpu.memory_space<vmem>>, %arg9: memref<33x256xf32, #tpu.memory_space<vmem>>) attributes {dimension_semantics = [#tpu.dimension_semantics<parallel>, #tpu.dimension_semantics<parallel>, #tpu.dimension_semantics<arbitrary>], iteration_bounds = array<i64: 2, 1, 1>, scalar_prefetch = 0 : i64, scratch_operands = 2 : i64, tpu.core_type = #tpu.core_type<tc>, window_params = [{transform_indices = @transform_0, window_bounds = array<i64: 1, 32, 256>}, {transform_indices = @transform_1, window_bounds = array<i64: 1, 8, 256>}, {transform_indices = @transform_2, window_bounds = array<i64: 1, 256, 8>}, {transform_indices = @transform_3, window_bounds = array<i64: 1, 33, 256>}, {transform_indices = @transform_4, window_bounds = array<i64: 1, 32, 256>}]} {
    %c0_i32 = arith.constant 0 : i32
    %0 = arith.cmpi eq, %arg2, %c0_i32 : i32
    %1 = arith.extui %0 : i1 to i32
    %c0_i32_0 = arith.constant 0 : i32
    %2 = arith.cmpi ne, %1, %c0_i32_0 : i32
    scf.if %2 {
      %cst_21 = arith.constant -1.000000e+30 : f32
      %29 = vector.broadcast %cst_21 : f32 to vector<1x256xf32>
      %c0_22 = arith.constant 0 : index
      %c0_23 = arith.constant 0 : index
      %30 = vector.load %arg8[%c0_22, %c0_23] : memref<1x256xf32, #tpu.memory_space<vmem>>, vector<1x256xf32>
      tpu.vector_store %arg8[%c0_22, %c0_23], %29 {strides = array<i32>} : memref<1x256xf32, #tpu.memory_space<vmem>>, vector<1x256xf32>,
      %cst_24 = arith.constant 0.000000e+00 : f32
      %31 = vector.broadcast %cst_24 : f32 to vector<33x256xf32>
      %c0_25 = arith.constant 0 : index
      %c0_26 = arith.constant 0 : index
      %32 = vector.load %arg9[%c0_25, %c0_26] : memref<33x256xf32, #tpu.memory_space<vmem>>, vector<33x256xf32>
      tpu.vector_store %arg9[%c0_25, %c0_26], %31 {strides = array<i32>} : memref<33x256xf32, #tpu.memory_space<vmem>>, vector<33x256xf32>,
    } else {
    }
    %c0 = arith.constant 0 : index
    %c0_1 = arith.constant 0 : index
    %c0_2 = arith.constant 0 : index
    %3 = vector.load %arg5[%c0, %c0_1, %c0_2] : memref<1x256x8xf32, #tpu.memory_space<vmem>>, vector<1x256x8xf32>
    %4 = vector.shape_cast %3 : vector<1x256x8xf32> to vector<256x8xf32>
    %c0_3 = arith.constant 0 : index
    %c0_4 = arith.constant 0 : index
    %c0_5 = arith.constant 0 : index
    %5 = vector.load %arg4[%c0_3, %c0_4, %c0_5] : memref<1x8x256xf32, #tpu.memory_space<vmem>>, vector<1x8x256xf32>
    %6 = vector.shape_cast %5 : vector<1x8x256xf32> to vector<8x256xf32>
    %cst = arith.constant dense<0.000000e+00> : vector<256x256xf32>
    %7 = tpu.matmul %4, %6, %cst {dimension_numbers = #tpu.dot_dimension_numbers<[1], [0], [0], [1], [0, 0, 1, 1], [], []>} : vector<256x8xf32>, vector<8x256xf32>, vector<256x256xf32> -> vector<256x256xf32>
    %c0_6 = arith.constant 0 : index
    %c0_7 = arith.constant 0 : index
    %8 = vector.load %arg8[%c0_6, %c0_7] : memref<1x256xf32, #tpu.memory_space<vmem>>, vector<1x256xf32>
    %cst_8 = arith.constant dense<0xFF800000> : vector<256xf32>
    %9 = vector.multi_reduction <maximumf>, %7, %cst_8 [0] : vector<256x256xf32> to vector<256xf32>
    %10 = vector.shape_cast %9 : vector<256xf32> to vector<1x256xf32>
    %11 = arith.maximumf %8, %10 : vector<1x256xf32>
    %12 = arith.subf %8, %11 : vector<1x256xf32>
    %13 = math.exp %12 : vector<1x256xf32>
    %14 = vector.broadcast %11 : vector<1x256xf32> to vector<256x256xf32>
    %15 = arith.subf %7, %14 : vector<256x256xf32>
    %16 = math.exp %15 : vector<256x256xf32>
    %c0_9 = arith.constant 0 : index
    %c0_10 = arith.constant 0 : index
    %17 = vector.load %arg9[%c0_9, %c0_10] : memref<33x256xf32, #tpu.memory_space<vmem>>, vector<33x256xf32>
    %18 = vector.broadcast %13 : vector<1x256xf32> to vector<33x256xf32>
    %19 = arith.mulf %18, %17 : vector<33x256xf32>
    %c0_11 = arith.constant 0 : index
    %c0_12 = arith.constant 0 : index
    %c0_13 = arith.constant 0 : index
    %20 = vector.load %arg6[%c0_11, %c0_12, %c0_13] : memref<1x33x256xf32, #tpu.memory_space<vmem>>, vector<1x33x256xf32>
    %21 = vector.shape_cast %20 : vector<1x33x256xf32> to vector<33x256xf32>
    %cst_14 = arith.constant dense<0.000000e+00> : vector<33x256xf32>
    %22 = tpu.matmul %21, %16, %cst_14 {dimension_numbers = #tpu.dot_dimension_numbers<[1], [0], [0], [1], [0, 0, 1, 1], [], []>} : vector<33x256xf32>, vector<256x256xf32>, vector<33x256xf32> -> vector<33x256xf32>
    %23 = arith.addf %19, %22 : vector<33x256xf32>
    %c0_15 = arith.constant 0 : index
    %c0_16 = arith.constant 0 : index
    %24 = vector.load %arg9[%c0_15, %c0_16] : memref<33x256xf32, #tpu.memory_space<vmem>>, vector<33x256xf32>
    tpu.vector_store %arg9[%c0_15, %c0_16], %23 {strides = array<i32>} : memref<33x256xf32, #tpu.memory_space<vmem>>, vector<33x256xf32>,
    %c0_17 = arith.constant 0 : index
    %c0_18 = arith.constant 0 : index
    %25 = vector.load %arg8[%c0_17, %c0_18] : memref<1x256xf32, #tpu.memory_space<vmem>>, vector<1x256xf32>
    tpu.vector_store %arg8[%c0_17, %c0_18], %11 {strides = array<i32>} : memref<1x256xf32, #tpu.memory_space<vmem>>, vector<1x256xf32>,
    %c0_i32_19 = arith.constant 0 : i32
    %26 = arith.cmpi eq, %arg2, %c0_i32_19 : i32
    %27 = arith.extui %26 : i1 to i32
    %c0_i32_20 = arith.constant 0 : i32
    %28 = arith.cmpi ne, %27, %c0_i32_20 : i32
    scf.if %28 {
      %c32 = arith.constant 32 : index
      %c0_21 = arith.constant 0 : index
      %29 = vector.load %arg9[%c32, %c0_21] : memref<33x256xf32, #tpu.memory_space<vmem>>, vector<1x256xf32>
      %30 = tpu.reciprocal %29 : vector<1x256xf32> -> vector<1x256xf32>
      %c0_22 = arith.constant 0 : index
      %c0_23 = arith.constant 0 : index
      %31 = vector.load %arg9[%c0_22, %c0_23] : memref<33x256xf32, #tpu.memory_space<vmem>>, vector<32x256xf32>
      %32 = vector.broadcast %30 : vector<1x256xf32> to vector<32x256xf32>
      %33 = arith.mulf %31, %32 : vector<32x256xf32>
      %c0_24 = arith.constant 0 : index
      %c0_25 = arith.constant 0 : index
      %c0_26 = arith.constant 0 : index
      %34 = vector.load %arg3[%c0_24, %c0_25, %c0_26] : memref<1x32x256xf32, #tpu.memory_space<vmem>>, vector<1x32x256xf32>
      %35 = vector.shape_cast %34 : vector<1x32x256xf32> to vector<32x256xf32>
      %36 = arith.addf %33, %35 : vector<32x256xf32>
      %c0_27 = arith.constant 0 : index
      %c0_28 = arith.constant 0 : index
      %c0_29 = arith.constant 0 : index
      %37 = vector.load %arg7[%c0_27, %c0_28, %c0_29] : memref<1x32x256xf32, #tpu.memory_space<vmem>>, vector<1x32x256xf32>
      %38 = vector.shape_cast %37 : vector<1x32x256xf32> to vector<32x256xf32>
      %39 = vector.shape_cast %36 : vector<32x256xf32> to vector<1x32x256xf32>
      tpu.vector_store %arg7[%c0_27, %c0_28, %c0_29], %39 {strides = array<i32>} : memref<1x32x256xf32, #tpu.memory_space<vmem>>, vector<1x32x256xf32>,
    } else {
    }
    return
  }
  func.func @transform_0(%arg0: i32, %arg1: i32, %arg2: i32) -> (i32, i32, i32) {
    %c0_i32 = arith.constant 0 : i32
    %c0_i32_0 = arith.constant 0 : i32
    return %arg0, %c0_i32, %arg1 : i32, i32, i32
  }
  func.func @transform_1(%arg0: i32, %arg1: i32, %arg2: i32) -> (i32, i32, i32) {
    %c0_i32 = arith.constant 0 : i32
    %c0_i32_0 = arith.constant 0 : i32
    return %arg0, %c0_i32, %arg1 : i32, i32, i32
  }
  func.func @transform_2(%arg0: i32, %arg1: i32, %arg2: i32) -> (i32, i32, i32) {
    %c0_i32 = arith.constant 0 : i32
    %c0_i32_0 = arith.constant 0 : i32
    return %arg0, %arg2, %c0_i32 : i32, i32, i32
  }
  func.func @transform_3(%arg0: i32, %arg1: i32, %arg2: i32) -> (i32, i32, i32) {
    %c0_i32 = arith.constant 0 : i32
    %c0_i32_0 = arith.constant 0 : i32
    return %arg0, %c0_i32, %arg2 : i32, i32, i32
  }
  func.func @transform_4(%arg0: i32, %arg1: i32, %arg2: i32) -> (i32, i32, i32) {
    %c0_i32 = arith.constant 0 : i32
    %c0_i32_0 = arith.constant 0 : i32
    return %arg0, %c0_i32, %arg1 : i32, i32, i32
  }
}

</mosaic_0001>

<bundles_post_ra>
// kernel: tpu_custom_call.1
= control target key start
LH: loop header
LB: loop body
LE: loop exit
PB: predicated region body
PF: predicated region fallthrough
CT: control target
= control target key end

     0   :  { %9 = vsyncpa [#allocation5], 0  ;;  %s2441_s0 = inlined_call_operand.vmem [shape: f32[2,32,256], index: 0, kind: input, shape index: {}]   ;;  %s2442_s1 = inlined_call_operand.vmem [shape: f32[2,8,256], index: 1, kind: input, shape index: {}]   ;;  %s2443_s2 = inlined_call_operand.vmem [shape: f32[2,256,8], index: 2, kind: input, shape index: {}]   ;;  %s2444_s3 = inlined_call_operand.vmem [shape: f32[2,33,256], index: 3, kind: input, shape index: {}]   ;;  %s2445_s4 = inlined_call_operand.hbm [shape: f32[2,32,256], index: 4, kind: output, shape index: {}]  }
   0x1   :  { %11 = vsyncpa [#allocation5 + $0x1], 0  ;;  %s1795_s15 = smov 0   ;;  %s1797_s16 = smov 0  }
   0x2   :  { %s1799_s17 = smov 0   ;;  %s1801_s18 = smov 0  }
   0x3   :  { %s1803_s19 = smov 0   ;;  %s1805_s20 = smov 0  }
   0x4 LB: > { %s1406_s21 = sadd.s32 4294967295, %s1764_s20   ;;  %s1407_s22 = sadd.s32 4294967294, %s1764_s20   ;;  %s1764_s20 = sphi %s1805_s20, %s17_s20   ;;  %s1760_s19 = sphi %s1803_s19, %s2523_s19   ;;  %s1756_s18 = sphi %s1801_s18, %s2522_s18   ;;  %s1752_s17 = sphi %s1799_s17, %s2521_s17   ;;  %s1748_s16 = sphi %s1797_s16, %s2520_s16   ;;  %s1744_s15 = sphi %s1795_s15, %s2519_s15  }
   0x5   : > { %s36_s23 = sadd.s32 1, %s1760_s19  ;;  %s157_s24 = sadd.s32 1, %s1752_s17 }
   0x6   : > { %p38_p0 = scmp.ge.s32.totalorder %s36_s23, 2  ;;  %p167_p1 = scmp.ne.s32.totalorder %s1752_s17, %s1748_s16 }
   0x7   : > { %p168_p2 = scmp.eq.s32.totalorder %s1406_s21, 1  ;;  %p173_p3 = scmp.ne.s32.totalorder %s1748_s16, %s1744_s15 }
   0x8   : > { %s2525_s23 = smov (%p38_p0, %s36_s23), 0  ;;  %p174_p5 = scmp.eq.s32.totalorder %s1407_s22, 1 }
   0x9   : > { %p1835_p4 = por %p168_p2, %p167_p1  ;;  %s152_s26 = ssub.s32 %s1760_s19, %s2525_s23 }
   0xa   : > { %p1410_p6 = scmp.ge.s32.totalorder %s1764_s20, 1  ;;  %p155_p7 = scmp.eq.s32.totalorder %s152_s26, 0 }
   0xb   : > { %p1842_p8 = por %p174_p5, %p173_p3  ;;  %p244_p9 = scmp.lt.s32.totalorder %s1764_s20, 3 }
   0xc   : > { %s1848_s28 = scalar_select %p155_p7, %s1752_s17, %s157_s24  }
   0xd   : > { %p245_p10 = pnand %p1410_p6, %p244_p9 }
   0xf   : > { %248 = sbr.rel (%p245_p10) target bundleno = 663 (0x297), region = 36 }
  0x14   : > { %p302_p11 = scmp.lt.s32.totalorder %s1756_s18, 1  ;;  %vm395_vm0 = vcmask 64512   ;;  %vm796_vm2 = vcmask 1040384   ;;  %s1491_s6 = sshll.u32 %s1756_s18, 6 }
  0x15   : > { %s1706_s24 = scalar_lea.hbm %s2445_s4, 128 }
  0x16   : > { %s1852_s29 = scalar_select %p302_p11, %s1756_s18, 1 }
  0x18   : > { %s1489_s30 = sshll.u32 %s1852_s29, 4  ;;  %s1490_s8 = sshll.u32 %s1852_s29, 8 }
  0x19   : > { %s319_s7 = scalar_lea.vmem %s2442_s1, %s1489_s30  ;;  %s1862_s11 = scalar_lea.vmem %s2443_s2, %s1490_s8 }
  0x1a   : > { %v393_v0 = vld [vmem:[%s319_s7] sm:$0xff]  ;;  %v394_v1 = vld [vmem:[%s319_s7 + $0x8] sm:$0xff]  ;;  %v363_v4 = vld [vmem:[%s1862_s11 + $0x10] sm:$0xff]  ;;  %s1494_s12 = smul.u32 80, %s1852_s29  ;;  %s1488_s22 = sshll.u32 %s1852_s29, 6 }
  0x1b   : > { %507 = vmatpush.msra.mxu0 %v393_v0  ;;  %1492 = vmatpush.msra.mxu2 %v393_v0  ;;  %v361_v2 = vld [vmem:[%s1862_s11] sm:$0xff]  ;;  %v362_v3 = vld [vmem:[%s1862_s11 + $0x8] sm:$0xff]  ;;  %v364_v5 = vld [vmem:[%s1862_s11 + $0x18] sm:$0xff]  ;;  %s2386_s30 = scalar_lea.vmem %s2441_s0, %s1488_s22  ;;  %s298_s29 = sand.u32 1, %s1748_s16  }
  0x1c   : > { %620 = vmatpush.msra.mxu1 %v394_v1  ;;  %1419 = vmatmul.msk.f32.vlgmr.msra.gmra.mxu0 %vm395_vm0, %v361_v2  ;;  %v365_v6 = vld [vmem:[%s1862_s11 + $0x20] sm:$0xff]  ;;  %v366_v7 = vld [vmem:[%s1862_s11 + $0x28] sm:$0xff]  ;;  %v367_v9 = vld [vmem:[%s1862_s11 + $0x30] sm:$0xff]  ;;  %s2246_s21 = scalar_lea.vmem %s2444_s3, %s1494_s12  ;;  %s1411_s5 = sshll.u32 %s298_s29, 6 }
  0x1d   : > { %1451 = vmatmul.msk.f32.vlgmr.msra.gmra.mxu1 %vm395_vm0, %v361_v2  ;;  %1493 = vmatpush.msra.mxu3 %v394_v1  ;;  %v1883_v8 = vld [vmem:[%s1862_s11 + $0xa8] sm:$0xff]  ;;  %v383_v10 = vld [vmem:[%s1862_s11 + $0xb0] sm:$0xff]  ;;  %v368_v11 = vld [vmem:[%s1862_s11 + $0x38] sm:$0xff]  ;;  %s1266_s8 = scalar_lea.hbm %s2445_s4, %s1491_s6  ;;  %s300_s9 = scalar_lea.vmem [#allocation4], %s1411_s5 }
  0x1e   : > { %1472 = vmatmul.msk.f32.vlgmr.msra.gmra.mxu3 %vm395_vm0, %v1883_v8  ;;  %1441 = vmatmul.msk.f32.vlgmr.msra.gmra.mxu2 %vm395_vm0, %v383_v10  ;;  %v384_v12 = vld [vmem:[%s1862_s11 + $0xb8] sm:$0xff]  ;;  %v369_v13 = vld [vmem:[%s1862_s11 + $0x40] sm:$0xff]  ;;  %v370_v15 = vld [vmem:[%s1862_s11 + $0x48] sm:$0xff]  ;;  %s1267_s10 = sshll.u32 %s300_s9, 4  ;;  %s1253_s12 = scalar_lea.sflag [#allocation5], %s298_s29  ;;  %s1268_s10 = int_to_ptr.vmem [resolvable:$true] %s1267_s10 }
  0x1f   : > { %v385_v14 = vld [vmem:[%s1862_s11 + $0xc0] sm:$0xff]  ;;  %v386_v16 = vld [vmem:[%s1862_s11 + $0xc8] sm:$0xff]  ;;  %v371_v17 = vld [vmem:[%s1862_s11 + $0x50] sm:$0xff] }
  0x20   : > { %v387_v18 = vld [vmem:[%s1862_s11 + $0xd0] sm:$0xff]  ;;  %v372_v19 = vld [vmem:[%s1862_s11 + $0x58] sm:$0xff]  ;;  %v373_v20 = vld [vmem:[%s1862_s11 + $0x60] sm:$0xff] }
  0x21   : > { %v388_v21 = vld [vmem:[%s1862_s11 + $0xd8] sm:$0xff]  ;;  %v374_v22 = vld [vmem:[%s1862_s11 + $0x68] sm:$0xff]  ;;  %v389_v23 = vld [vmem:[%s1862_s11 + $0xe0] sm:$0xff] }
  0x22   : > { %v375_v24 = vld [vmem:[%s1862_s11 + $0x70] sm:$0xff]  ;;  %v390_v25 = vld [vmem:[%s1862_s11 + $0xe8] sm:$0xff]  ;;  %v376_v26 = vld [vmem:[%s1862_s11 + $0x78] sm:$0xff] }
  0x23   : > { %v391_v27 = vld [vmem:[%s1862_s11 + $0xf0] sm:$0xff]  ;;  %v377_v29 = vld [vmem:[%s1862_s11 + $0x80] sm:$0xff]  ;;  %v392_v31 = vld [vmem:[%s1862_s11 + $0xf8] sm:$0xff] }
  0x24   : > { %1420 = vmatmul.msk.f32.gmra.mxu0 %vm395_vm0, %v362_v3  ;;  %v378_v33 = vld [vmem:[%s1862_s11 + $0x88] sm:$0xff]  ;;  %v379_v36 = vld [vmem:[%s1862_s11 + $0x90] sm:$0xff]  ;;  %v380_v39 = vld [vmem:[%s1862_s11 + $0x98] sm:$0xff] }
  0x25   : > { %1452 = vmatmul.msk.f32.gmra.mxu1 %vm395_vm0, %v362_v3  ;;  %v381_v42 = vld [vmem:[%s1862_s11 + $0xa0] sm:$0xff]  ;;  %s1269_s11 = sshll.u32 %s1266_s8, 4  ;;  %s1270_s11 = int_to_ptr.hbm [resolvable:$true] %s1269_s11 }
  0x26   : > { %1473 = vmatmul.msk.f32.gmra.mxu3 %vm395_vm0, %v383_v10  ;;  %1442 = vmatmul.msk.f32.gmra.mxu2 %vm395_vm0, %v384_v12  ;;  %s1700_s13 = sshra.s32 %s1270_s11, 4  ;;  %s1701_s13 = int_to_ptr.hbm [resolvable:$true] %s1700_s13 }
  0x27   : > { %s1702_s14 = scalar_lea.hbm %s1701_s13, 64  ;;  %p1707_p1 = scmp.lt.s32.totalorder %s1701_s13, %s2445_s4 }
  0x28   : > { %p1703_p12 = scmp.ne.s32.totalorder %s1701_s13, %s1702_s14  ;;  %p1708_p2 = scmp.lt.s32.totalorder %s1706_s24, %s1702_s14 }
  0x2a   : > { %p1704_p13 = pnand %p1703_p12, %p1835_p4  ;;  %p1709_p3 = por %p1708_p2, %p1707_p1 }
  0x2c   : > { %1421 = vmatmul.msk.f32.gmra.mxu0 %vm395_vm0, %v363_v4  ;;  %p1705_p0 = pneg %p1704_p13 }
  0x2d   : > { %1453 = vmatmul.msk.f32.gmra.mxu1 %vm395_vm0, %v363_v4 }
  0x2e   : > { %1474 = vmatmul.msk.f32.gmra.mxu3 %vm395_vm0, %v384_v12  ;;  %1443 = vmatmul.msk.f32.gmra.mxu2 %vm395_vm0, %v385_v14  ;;  %p1710_p5 = pnand %p1709_p3, %p1705_p0 }
  0x34   : > { %1422 = vmatmul.msk.f32.gmra.mxu0 %vm395_vm0, %v364_v5 }
  0x35   : > { %1454 = vmatmul.msk.f32.gmra.mxu1 %vm395_vm0, %v364_v5 }
  0x36   : > { %1475 = vmatmul.msk.f32.gmra.mxu3 %vm395_vm0, %v385_v14  ;;  %1444 = vmatmul.msk.f32.gmra.mxu2 %vm395_vm0, %v386_v16 }
  0x3c   : > { %1423 = vmatmul.msk.f32.gmra.mxu0 %vm395_vm0, %v365_v6 }
  0x3d   : > { %1455 = vmatmul.msk.f32.gmra.mxu1 %vm395_vm0, %v365_v6 }
  0x3e   : > { %1476 = vmatmul.msk.f32.gmra.mxu3 %vm395_vm0, %v386_v16  ;;  %1445 = vmatmul.msk.f32.gmra.mxu2 %vm395_vm0, %v387_v18 }
  0x44   : > { %1424 = vmatmul.msk.f32.gmra.mxu0 %vm395_vm0, %v366_v7 }
  0x45   : > { %1456 = vmatmul.msk.f32.gmra.mxu1 %vm395_vm0, %v366_v7 }
  0x46   : > { %1477 = vmatmul.msk.f32.gmra.mxu3 %vm395_vm0, %v387_v18  ;;  %1446 = vmatmul.msk.f32.gmra.mxu2 %vm395_vm0, %v388_v21 }
  0x4c   : > { %1425 = vmatmul.msk.f32.gmra.mxu0 %vm395_vm0, %v367_v9 }
  0x4d   : > { %1457 = vmatmul.msk.f32.gmra.mxu1 %vm395_vm0, %v367_v9 }
  0x4e   : > { %1478 = vmatmul.msk.f32.gmra.mxu3 %vm395_vm0, %v388_v21  ;;  %1447 = vmatmul.msk.f32.gmra.mxu2 %vm395_vm0, %v389_v23 }
  0x54   : > { %1426 = vmatmul.msk.f32.gmra.mxu0 %vm395_vm0, %v368_v11 }
  0x55   : > { %1458 = vmatmul.msk.f32.gmra.mxu1 %vm395_vm0, %v368_v11 }
  0x56   : > { %1479 = vmatmul.msk.f32.gmra.mxu3 %vm395_vm0, %v389_v23  ;;  %1448 = vmatmul.msk.f32.gmra.mxu2 %vm395_vm0, %v390_v25 }
  0x5c   : > { %1427 = vmatmul.msk.f32.gmra.mxu0 %vm395_vm0, %v369_v13 }
  0x5d   : > { %1459 = vmatmul.msk.f32.gmra.mxu1 %vm395_vm0, %v369_v13 }
  0x5e   : > { %1480 = vmatmul.msk.f32.gmra.mxu3 %vm395_vm0, %v390_v25  ;;  %1449 = vmatmul.msk.f32.gmra.mxu2 %vm395_vm0, %v391_v27 }
  0x64   : > { %1428 = vmatmul.msk.f32.gmra.mxu0 %vm395_vm0, %v370_v15 }
  0x65   : > { %1460 = vmatmul.msk.f32.gmra.mxu1 %vm395_vm0, %v370_v15 }
  0x66   : > { %1481 = vmatmul.msk.f32.gmra.mxu3 %vm395_vm0, %v391_v27  ;;  %1450 = vmatmul.msk.f32.gmra.mxu2 %vm395_vm0, %v392_v31 }
  0x6c   : > { %1429 = vmatmul.msk.f32.gmra.mxu0 %vm395_vm0, %v371_v17 }
  0x6d   : > { %1461 = vmatmul.msk.f32.gmra.mxu1 %vm395_vm0, %v371_v17 }
  0x6e   : > { %1482 = vmatmul.msk.f32.gmra.mxu3 %vm395_vm0, %v392_v31 }
  0x74   : > { %1430 = vmatmul.msk.f32.gmra.mxu0 %vm395_vm0, %v372_v19 }
  0x75   : > { %1462 = vmatmul.msk.f32.gmra.mxu1 %vm395_vm0, %v372_v19 }
  0x7c   : > { %1431 = vmatmul.msk.f32.gmra.mxu0 %vm395_vm0, %v373_v20 }
  0x7d   : > { %1463 = vmatmul.msk.f32.gmra.mxu1 %vm395_vm0, %v373_v20 }
  0x84   : > { %1432 = vmatmul.msk.f32.gmra.mxu0 %vm395_vm0, %v374_v22 }
  0x85   : > { %1464 = vmatmul.msk.f32.gmra.mxu1 %vm395_vm0, %v374_v22 }
  0x8c   : > { %1433 = vmatmul.msk.f32.gmra.mxu0 %vm395_vm0, %v375_v24 }
  0x8d   : > { %1465 = vmatmul.msk.f32.gmra.mxu1 %vm395_vm0, %v375_v24 }
  0x94   : > { %1434 = vmatmul.msk.f32.gmra.mxu0 %vm395_vm0, %v376_v26 }
  0x95   : > { %1466 = vmatmul.msk.f32.gmra.mxu1 %vm395_vm0, %v376_v26 }
  0x99   : > { %v1944_v28 = vpop.f32.mrf.mxu0 }
  0x9a   : > { %v1947_v30 = vpop.f32.mrf.mxu1 }
  0x9b   : > { %2471 = vst [vmem:[#allocation7_spill] sm:$0xff] %v1947_v30 }
  0x9c   : > { %1435 = vmatmul.msk.f32.gmra.mxu0 %vm395_vm0, %v377_v29 }
  0x9d   : > { %1467 = vmatmul.msk.f32.gmra.mxu1 %vm395_vm0, %v377_v29 }
  0xa1   : > { %v1954_v32 = vpop.f32.mrf.mxu0  ;;  %v2000_v52 = vpop.f32.mrf.mxu3 }
  0xa2   : > { %v1957_v34 = vpop.f32.mrf.mxu1  ;;  %2478 = vst [vmem:[#allocation14_spill] sm:$0xff] %v2000_v52  ;;  %v2012_v58 = vpop.f32.mrf.mxu2 }
  0xa3   : > { %2472 = vst [vmem:[#allocation8_spill] sm:$0xff] %v1957_v34 }
  0xa4   : > { %1436 = vmatmul.msk.f32.gmra.mxu0 %vm395_vm0, %v378_v33 }
  0xa5   : > { %1468 = vmatmul.msk.f32.gmra.mxu1 %vm395_vm0, %v378_v33 }
  0xa9   : > { %v1961_v35 = vpop.f32.mrf.mxu0  ;;  %v2006_v55 = vpop.f32.mrf.mxu3 }
  0xaa   : > { %v1964_v37 = vpop.f32.mrf.mxu1  ;;  %2479 = vst [vmem:[#allocation15_spill] sm:$0xff] %v2006_v55  ;;  %v2022_v63 = vpop.f32.mrf.mxu2  ;;  %v719_v23 = vmax.f32 %v1944_v28, %v1961_v35 }
  0xab   : > { %2473 = vst [vmem:[#allocation9_spill] sm:$0xff] %v1964_v37  ;;  %v756_v24 = vmax.f32 %v1947_v30, %v1964_v37 }
  0xac   : > { %1437 = vmatmul.msk.f32.gmra.mxu0 %vm395_vm0, %v379_v36 }
  0xad   : > { %1469 = vmatmul.msk.f32.gmra.mxu1 %vm395_vm0, %v379_v36 }
  0xb1   : > { %v1968_v38 = vpop.f32.mrf.mxu0  ;;  %v2018_v61 = vpop.f32.mrf.mxu3 }
  0xb2   : > { %v1971_v40 = vpop.f32.mrf.mxu1  ;;  %2480 = vst [vmem:[#allocation16_spill] sm:$0xff] %v2018_v61  ;;  %v2032_v4 = vpop.f32.mrf.mxu2 }
  0xb3   : > { %2474 = vst [vmem:[#allocation10_spill] sm:$0xff] %v1971_v40  ;;  %v757_v19 = vmax.f32 %v1957_v34, %v1971_v40  ;;  %v346_v40 = vlaneseq }
  0xb4   : > { %1438 = vmatmul.msk.f32.gmra.mxu0 %vm395_vm0, %v380_v39 }
  0xb5   : > { %1470 = vmatmul.msk.f32.gmra.mxu1 %vm395_vm0, %v380_v39  ;;  %vm2109_vm1 = vcmp.lt.s32.totalorder %v346_v40, 256 }
  0xb9   : > { %v1975_v41 = vpop.f32.mrf.mxu0  ;;  %v2026_v1 = vpop.f32.mrf.mxu3 }
  0xba   : > { %v1978_v43 = vpop.f32.mrf.mxu1  ;;  %2481 = vst [vmem:[#allocation17_spill] sm:$0xff] %v2026_v1  ;;  %v721_v27 = vmax.f32 %v719_v23, %v1975_v41 }
  0xbb   : > { %2475 = vst [vmem:[#allocation11_spill] sm:$0xff] %v1978_v43  ;;  %v758_v31 = vmax.f32 %v756_v24, %v1978_v43  ;;  %v720_v24 = vmax.f32 %v1954_v32, %v1968_v38 }
  0xbc   : > { %1439 = vmatmul.msk.f32.gmra.mxu0 %vm395_vm0, %v381_v42 }
  0xbd   : > { %1471 = vmatmul.msk.f32.gmra.mxu1 %vm395_vm0, %v381_v42 }
  0xc1   : > { %v1982_v44 = vpop.f32.mrf.mxu0  ;;  %v2034_v5 = vpop.f32.mrf.mxu3 }
  0xc2   : > { %v1984_v45 = vpop.f32.mrf.mxu1  ;;  %2482 = vst [vmem:[#allocation18_spill] sm:$0xff] %v2034_v5 }
  0xc3   : > { %2476 = vst [vmem:[#allocation12_spill] sm:$0xff] %v1984_v45  ;;  %v759_v21 = vmax.f32 %v757_v19, %v1984_v45 }
  0xc4   : > { %1440 = vmatmul.msk.f32.gmra.mxu0 %vm395_vm0, %v1883_v8  ;;  %v2040_v8 = vpop.f32.mrf.mxu2 }
  0xc9   : > { %v1988_v46 = vpop.f32.mrf.mxu0  ;;  %v2042_v9 = vpop.f32.mrf.mxu3 }
  0xca   : > { %v1990_v47 = vpop.f32.mrf.mxu1  ;;  %2483 = vst [vmem:[#allocation19_spill] sm:$0xff] %v2042_v9  ;;  %v723_v39 = vmax.f32 %v721_v27, %v1988_v46 }
  0xcb   : > { %2477 = vst [vmem:[#allocation13_spill] sm:$0xff] %v1990_v47  ;;  %v760_v42 = vmax.f32 %v758_v31, %v1990_v47 }
  0xcc   : > { %v2048_v12 = vpop.f32.mrf.mxu2 }
  0xd1   : > { %v1992_v48 = vpop.f32.mrf.mxu0  ;;  %v2054_v15 = vpop.f32.mrf.mxu3 }
  0xd2   : > { %v1994_v49 = vpop.f32.mrf.mxu1  ;;  %2486 = vst [vmem:[#allocation22_spill] sm:$0xff] %v2054_v15 }
  0xd3   : > { %v761_v22 = vmax.f32 %v759_v21, %v1994_v49 }
  0xd4   : > { %v2058_v17 = vpop.f32.mrf.mxu2 }
  0xd9   : > { %v1996_v50 = vpop.f32.mrf.mxu0  ;;  %v2064_v20 = vpop.f32.mrf.mxu3 }
  0xda   : > { %v1998_v51 = vpop.f32.mrf.mxu1  ;;  %2489 = vst [vmem:[#allocation25_spill] sm:$0xff] %v2064_v20  ;;  %v725_v21 = vmax.f32 %v723_v39, %v1996_v50 }
  0xdb   : > { %v762_v23 = vmax.f32 %v760_v42, %v1998_v51 }
  0xdc   : > { %v2080_v36 = vpop.f32.mrf.mxu2 }
  0xe1   : > { %v2002_v53 = vpop.f32.mrf.mxu0 }
  0xe2   : > { %v2004_v54 = vpop.f32.mrf.mxu1 }
  0xe3   : > { %v763_v25 = vmax.f32 %v761_v22, %v2004_v54  ;;  %v2086_v22 = vpop.f32.mrf.mxu3 }
  0xe4   : > { %2491 = vst [vmem:[#allocation27_spill] sm:$0xff] %v2086_v22 }
  0xe9   : > { %v2008_v56 = vpop.f32.mrf.mxu0 }
  0xea   : > { %v2010_v57 = vpop.f32.mrf.mxu1 }
  0xeb   : > { %v764_v34 = vmax.f32 %v762_v23, %v2010_v57  ;;  %v2121_v40 = vpop.f32.mrf.mxu3 }
  0xec   : > { %2494 = vst [vmem:[#allocation28_spill] sm:$0xff] %v2121_v40 }
  0xf1   : > { %v2014_v59 = vpop.f32.mrf.mxu0 }
  0xf2   : > { %v2016_v60 = vpop.f32.mrf.mxu1 }
  0xf3   : > { %v765_v33 = vmax.f32 %v763_v25, %v2016_v60  ;;  %v727_v25 = vmax.f32 %v725_v21, %v2008_v56 }
  0xf9   : > { %v2020_v62 = vpop.f32.mrf.mxu0 }
  0xfa   : > { %v2024_v0 = vpop.f32.mrf.mxu1  ;;  %v729_v39 = vmax.f32 %v727_v25, %v2020_v62 }
  0xfb   : > { %v766_v42 = vmax.f32 %v764_v34, %v2024_v0 }
 0x101   : > { %v2028_v2 = vpop.f32.mrf.mxu0 }
 0x102   : > { %v2030_v3 = vpop.f32.mrf.mxu1 }
 0x103   : > { %v767_v19 = vmax.f32 %v765_v33, %v2030_v3  ;;  %v722_v33 = vmax.f32 %v720_v24, %v1982_v44 }
 0x105   : > { %v724_v43 = vmax.f32 %v722_v33, %v1992_v48 }
 0x107   : > { %v726_v25 = vmax.f32 %v724_v43, %v2002_v53 }
 0x109   : > { %v2036_v6 = vpop.f32.mrf.mxu0 }
 0x10a   : > { %v2038_v7 = vpop.f32.mrf.mxu1  ;;  %v731_v21 = vmax.f32 %v729_v39, %v2036_v6 }
 0x10b   : > { %v768_v23 = vmax.f32 %v766_v42, %v2038_v7  ;;  %v728_v42 = vmax.f32 %v726_v25, %v2014_v59 }
 0x111   : > { %v2044_v10 = vpop.f32.mrf.mxu0 }
 0x112   : > { %v2046_v11 = vpop.f32.mrf.mxu1 }
 0x113   : > { %v769_v30 = vmax.f32 %v767_v19, %v2046_v11 }
 0x119   : > { %v2050_v13 = vpop.f32.mrf.mxu0 }
 0x11a   : > { %2484 = vst [vmem:[#allocation20_spill] sm:$0xff] %v2050_v13  ;;  %v2052_v14 = vpop.f32.mrf.mxu1  ;;  %v733_v34 = vmax.f32 %v731_v21, %v2050_v13  ;;  %v730_v21 = vmax.f32 %v728_v42, %v2028_v2 }
 0x11b   : > { %2485 = vst [vmem:[#allocation21_spill] sm:$0xff] %v2052_v14  ;;  %v770_v33 = vmax.f32 %v768_v23, %v2052_v14 }
 0x121   : > { %v2056_v16 = vpop.f32.mrf.mxu0 }
 0x122   : > { %2487 = vst [vmem:[#allocation23_spill] sm:$0xff] %v2056_v16  ;;  %v2060_v18 = vpop.f32.mrf.mxu1 }
 0x123   : > { %2488 = vst [vmem:[#allocation24_spill] sm:$0xff] %v2060_v18  ;;  %v771_v27 = vmax.f32 %v769_v30, %v2060_v18  ;;  %v2107_v18 = vpop.f32.mrf.mxu2 }
 0x129   : > { %v2073_v26 = vpop.f32.mrf.mxu0 }
 0x12a   : > { %2490 = vst [vmem:[#allocation26_spill] sm:$0xff] %v2073_v26  ;;  %v2076_v29 = vpop.f32.mrf.mxu1 }
 0x131   : > { %v2095_v31 = vpop.f32.mrf.mxu0 }
 0x132   : > { %v2099_v37 = vpop.f32.mrf.mxu1 }
 0x133   : > { %v773_v19 = vmax.f32 %v771_v27, %v2099_v37  ;;  %v1766_v27 = vmov -1e+30  }
 0x134   : > { %350 = vst.msk [vmem:[#allocation2] sm:$0x3] %vm2109_vm1, %v1766_v27 }
 0x135   : > { %v775_v30 = vmax.f32 %v773_v19, %v2000_v52  ;;  %v735_v19 = vmax.f32 %v733_v34, %v2073_v26  ;;  %v772_v52 = vmax.f32 %v770_v33, %v2076_v29 }
 0x137   : > { %v777_v39 = vmax.f32 %v775_v30, %v2018_v61  ;;  %v732_v30 = vmax.f32 %v730_v21, %v2044_v10  ;;  %v2138_v61 = vpop.f32.mrf.mxu2 }
 0x139   : > { %v2124_v45 = vpop.f32.mrf.mxu0  ;;  %v779_v43 = vmax.f32 %v777_v39, %v2034_v5  ;;  %v734_v14 = vmax.f32 %v732_v30, %v2056_v16 }
 0x13a   : > { %v737_v27 = vmax.f32 %v735_v19, %v2124_v45  ;;  %v2129_v13 = vpop.f32.mrf.mxu1 }
 0x13b   : > { %v774_v23 = vmax.f32 %v772_v52, %v2129_v13  ;;  %v781_v33 = vmax.f32 %v779_v43, %v2054_v15  ;;  %v736_v42 = vmax.f32 %v734_v14, %v2095_v31  ;;  %v718_v16 = vld [vmem:[#allocation2] sm:$0x3] }
 0x13c   : > { %v739_v25 = vmax.f32 %v737_v27, %v2012_v58  ;;  %v2146_v27 = vpop.f32.mrf.mxu3 }
 0x13d   : > { %v776_v34 = vmax.f32 %v774_v23, %v2006_v55  ;;  %v783_v21 = vmax.f32 %v781_v33, %v2086_v22  ;;  %2495 = vst [vmem:[#allocation29_spill] sm:$0xff] %v2146_v27 }
 0x13e   : > { %v741_v19 = vmax.f32 %v739_v25, %v2032_v4 }
 0x13f   : > { %v778_v39 = vmax.f32 %v776_v34, %v2026_v1  ;;  %v785_v25 = vmax.f32 %v783_v21, %v2146_v27  ;;  %v602_v15 = vpop.f32.mrf.mxu2 }
 0x140   : > { %v743_v34 = vmax.f32 %v741_v19, %v2048_v12 }
 0x141   : > { %v780_v52 = vmax.f32 %v778_v39, %v2042_v9  ;;  %v2144_v5 = vpop.f32.mrf.mxu0 }
 0x142   : > { %v738_v43 = vmax.f32 %v736_v42, %v2144_v5  ;;  %v745_v33 = vmax.f32 %v743_v34, %v2080_v36 }
 0x143   : > { %v782_v23 = vmax.f32 %v780_v52, %v2064_v20 }
 0x144   : > { %v740_v30 = vmax.f32 %v738_v43, %v2022_v63  ;;  %v747_v43 = vmax.f32 %v745_v33, %v2138_v61 }
 0x145   : > { %v784_v14 = vmax.f32 %v782_v23, %v2121_v40 }
 0x146   : > { %v742_v39 = vmax.f32 %v740_v30, %v2040_v8 }
 0x147   : > { %v786_v55 = vmax.f32 %v784_v14, %v785_v25 }
 0x148   : > { %v744_v1 = vmax.f32 %v742_v39, %v2058_v17 }
 0x149   : > { %v787_v9 = vrot.slane %v786_v55, 4 }
 0x14a   : > { %v746_v42 = vmax.f32 %v744_v1, %v2107_v18 }
 0x14b   : > { %v788_v52 = vmax.f32 %v786_v55, %v787_v9 }
 0x14c   : > { %v748_v20 = vmax.f32 %v746_v42, %v602_v15 }
 0x14d   : > { %v789_v19 = vrot.slane %v788_v52, 2 }
 0x14e   : > { %v749_v22 = vmax.f32 %v747_v43, %v748_v20 }
 0x14f   : > { %v790_v23 = vmax.f32 %v788_v52, %v789_v19 }
 0x150   : > { %v750_v40 = vrot.slane %v749_v22, 4 }
 0x151   : > { %v791_v21 = vrot.slane %v790_v23, 1 }
 0x152   : > { %v751_v27 = vmax.f32 %v749_v22, %v750_v40 }
 0x153   : > { %v792_v14 = vmax.f32 %v790_v23, %v791_v21 }
 0x154   : > { %v752_v30 = vrot.slane %v751_v27, 2 }
 0x155   : > { %v795_v39 = vrot.slane %v792_v14, 7  ;;  %v1767_v14 = vmov 0.0  }
 0x156   : > { %v753_v25 = vmax.f32 %v751_v27, %v752_v30  ;;  %359 = vst [vmem:[#allocation3 + $0x40] sm:$0x1] %v1767_v14 }
 0x157   : > { %360 = vst [vmem:[#allocation3 + $0x48] sm:$0x1] %v1767_v14 }
 0x158   : > { %v754_v34 = vrot.slane %v753_v25, 1 }
 0x15a   : > { %v755_v26 = vmax.f32 %v753_v25, %v754_v34 }
 0x15c   : > { %v797_v47 = vsel %vm796_vm2, %v755_v26, %v795_v39 }
 0x15d   : > { %v799_v1 = vmax.f32 %v718_v16, %v797_v47 }
 0x15f   : > { %v800_v55 = vsub.f32 %v718_v16, %v799_v1  ;;  %v2159_v9 = vperm.slane %v799_v1, 0  ;;  %1187 = vst.msk [vmem:[#allocation2] sm:$0x3] %vm2109_vm1, %v799_v1  ;;  %v2164_v22 = vperm.slane %v799_v1, 1 }
 0x161   : > { %v870_v20 = vsub.f32 %v602_v15, %v2159_v9  ;;  %v845_v27 = vsub.f32 %v2076_v29, %v2164_v22  ;;  %v846_v26 = vsub.f32 %v2095_v31, %v2159_v9  ;;  %v847_v47 = vsub.f32 %v2099_v37, %v2164_v22  ;;  %v2504_v31 = vld [vmem:[#allocation8_spill] sm:$0xff] }
 0x162   : > { %v848_v16 = vsub.f32 %v2124_v45, %v2159_v9  ;;  %v849_v15 = vsub.f32 %v2129_v13, %v2164_v22  ;;  %v850_v24 = vsub.f32 %v2144_v5, %v2159_v9  ;;  %v801_v42 = vmul.f32 1.442695, %v800_v55  ;;  %v2518_v13 = vld [vmem:[#allocation21_spill] sm:$0xff] }
 0x163   : > { %v996_v33 = vmul.f32 1.442695, %v870_v20  ;;  %v838_v52 = vsub.f32 %v2044_v10, %v2159_v9  ;;  %v836_v43 = vsub.f32 %v2036_v6, %v2159_v9  ;;  %v834_v19 = vsub.f32 %v2028_v2, %v2159_v9 }
 0x164   : > { %v832_v21 = vsub.f32 %v2020_v62, %v2159_v9  ;;  %v830_v25 = vsub.f32 %v2014_v59, %v2159_v9  ;;  %v828_v6 = vsub.f32 %v2008_v56, %v2159_v9  ;;  %v826_v2 = vsub.f32 %v2002_v53, %v2159_v9 }
 0x165   : > { %1554 = vpow2.f32 %v996_v33  ;;  %v932_v23 = vmul.f32 1.442695, %v838_v52  ;;  %v928_v30 = vmul.f32 1.442695, %v836_v43  ;;  %v924_v34 = vmul.f32 1.442695, %v834_v19 }
 0x166   : > { %1556 = vpow2.f32 %v801_v42  ;;  %v920_v39 = vmul.f32 1.442695, %v832_v21  ;;  %v916_v62 = vmul.f32 1.442695, %v830_v25  ;;  %v824_v20 = vsub.f32 %v1996_v50, %v2159_v9 }
 0x167   : > { %1558 = vpow2.f32 %v932_v23  ;;  %v912_v33 = vmul.f32 1.442695, %v828_v6  ;;  %v822_v42 = vsub.f32 %v1992_v48, %v2159_v9  ;;  %v908_v52 = vmul.f32 1.442695, %v826_v2 }
 0x168   : > { %1560 = vpow2.f32 %v928_v30  ;;  %v820_v50 = vsub.f32 %v1988_v46, %v2159_v9  ;;  %v904_v19 = vmul.f32 1.442695, %v824_v20  ;;  %v818_v21 = vsub.f32 %v1982_v44, %v2159_v9 }
 0x169   : > { %1562 = vpow2.f32 %v924_v34  ;;  %v900_v30 = vmul.f32 1.442695, %v822_v42  ;;  %v816_v48 = vsub.f32 %v1975_v41, %v2159_v9  ;;  %v814_v46 = vsub.f32 %v1968_v38, %v2159_v9 }
 0x16a   : > { %1564 = vpow2.f32 %v920_v39  ;;  %v896_v25 = vmul.f32 1.442695, %v820_v50  ;;  %v892_v6 = vmul.f32 1.442695, %v818_v21  ;;  %v812_v44 = vsub.f32 %v1961_v35, %v2159_v9 }
 0x16b   : > { %v1555_v40 = vpop.eup %1554  ;;  %1566 = vpow2.f32 %v916_v62  ;;  %v888_v2 = vmul.f32 1.442695, %v816_v48  ;;  %v810_v41 = vsub.f32 %v1954_v32, %v2159_v9  ;;  %v808_v20 = vsub.f32 %v1944_v28, %v2159_v9 }
 0x16c   : > { %1067 = vmatpush.msrb.mxu3 %v1555_v40  ;;  %v2188_v10 = vpop.eup %1556  ;;  %1568 = vpow2.f32 %v912_v33  ;;  %v868_v33 = vsub.f32 %v2138_v61, %v2159_v9  ;;  %v839_v35 = vsub.f32 %v2046_v11, %v2164_v22  ;;  %v866_v32 = vsub.f32 %v2107_v18, %v2159_v9 }
 0x16d   : > { %v1011_v1 = vperm.slane %v2188_v10, 0  ;;  %v1012_v55 = vperm.slane %v2188_v10, 1  ;;  %v1559_v59 = vpop.eup %1558  ;;  %1570 = vpow2.f32 %v908_v52  ;;  %v876_v52 = vmul.f32 1.442695, %v810_v41  ;;  %v2257_v41 = vld [vmem:[%s2246_s21] sm:$0xff] }
 0x16e   : > { %1035 = vmatpush.msrb.mxu2 %v1559_v59  ;;  %v1561_v40 = vpop.eup %1560  ;;  %1572 = vpow2.f32 %v904_v19  ;;  %v884_v59 = vmul.f32 1.442695, %v814_v46  ;;  %v837_v28 = vsub.f32 %v2038_v7, %v2164_v22  ;;  %v864_v61 = vsub.f32 %v2080_v36, %v2159_v9 }
 0x16f   : > { %v2200_v56 = vmul.f32 0.0, %v1011_v1  ;;  %v2204_v53 = vmul.f32 0.0, %v1012_v55  ;;  %v1563_v43 = vpop.eup %1562  ;;  %1574 = vpow2.f32 %v900_v30  ;;  %v992_v19 = vmul.f32 1.442695, %v868_v33 }
 0x170   : > { %1036 = vmatpush.msrb.mxu2 %v1561_v40  ;;  %v1565_v23 = vpop.eup %1564  ;;  %1576 = vpow2.f32 %v896_v25  ;;  %v880_v40 = vmul.f32 1.442695, %v812_v44  ;;  %v835_v11 = vsub.f32 %v2030_v3, %v2164_v22  ;;  %v862_v18 = vsub.f32 %v2058_v17, %v2159_v9 }
 0x171   : > { %v1567_v14 = vpop.eup %1566  ;;  %1578 = vpow2.f32 %v892_v6  ;;  %v988_v7 = vmul.f32 1.442695, %v866_v32  ;;  %v833_v30 = vsub.f32 %v2024_v0, %v2164_v22  ;;  %v860_v48 = vsub.f32 %v2048_v12, %v2159_v9 }
 0x172   : > { %1037 = vmatpush.msrb.mxu2 %v1563_v43  ;;  %v1569_v34 = vpop.eup %1568  ;;  %1580 = vpow2.f32 %v888_v2  ;;  %v872_v43 = vmul.f32 1.442695, %v808_v20  ;;  %v984_v3 = vmul.f32 1.442695, %v864_v61  ;;  %v831_v25 = vsub.f32 %v2016_v60, %v2164_v22 }
 0x173   : > { %v1571_v39 = vpop.eup %1570  ;;  %1582 = vpow2.f32 %v884_v59  ;;  %v858_v0 = vsub.f32 %v2040_v8, %v2159_v9  ;;  %v980_v46 = vmul.f32 1.442695, %v862_v18  ;;  %v829_v12 = vsub.f32 %v2010_v57, %v2164_v22  ;;  %v2273_v18 = vld [vmem:[%s2246_s21 + $0x10] sm:$0xff] }
 0x174   : > { %1038 = vmatpush.msrb.mxu2 %v1565_v23  ;;  %v1573_v62 = vpop.eup %1572  ;;  %1584 = vpow2.f32 %v880_v40  ;;  %v934_v23 = vmul.f32 1.442695, %v839_v35  ;;  %v922_v6 = vmul.f32 1.442695, %v833_v30  ;;  %v976_v44 = vmul.f32 1.442695, %v860_v48 }
 0x175   : > { %v1575_v38 = vpop.eup %1574  ;;  %1586 = vpow2.f32 %v876_v52  ;;  %v918_v8 = vmul.f32 1.442695, %v831_v25  ;;  %v854_v57 = vsub.f32 %v2022_v63, %v2159_v9  ;;  %v972_v20 = vmul.f32 1.442695, %v858_v0 }
 0x176   : > { %1039 = vmatpush.msrb.mxu2 %v1567_v14  ;;  %v1577_v42 = vpop.eup %1576  ;;  %1588 = vpow2.f32 %v872_v43  ;;  %v930_v14 = vmul.f32 1.442695, %v837_v28  ;;  %v914_v33 = vmul.f32 1.442695, %v829_v12  ;;  %v852_v40 = vsub.f32 %v2012_v58, %v2159_v9  ;;  %v2496_v43 = vld [vmem:[#allocation13_spill] sm:$0xff] }
 0x177   : > { %v1579_v50 = vpop.eup %1578  ;;  %1590 = vpow2.f32 %v992_v19  ;;  %v823_v63 = vsub.f32 %v1994_v49, %v2164_v22  ;;  %v964_v52 = vmul.f32 1.442695, %v854_v57  ;;  %v821_v58 = vsub.f32 %v2496_v43, %v2164_v22 }
 0x178   : > { %1040 = vmatpush.msrb.mxu2 %v1569_v34  ;;  %v1581_v21 = vpop.eup %1580  ;;  %v926_v34 = vmul.f32 1.442695, %v835_v11  ;;  %1592 = vpow2.f32 %v934_v23  ;;  %v960_v19 = vmul.f32 1.442695, %v852_v40  ;;  %v2497_v11 = vld [vmem:[#allocation12_spill] sm:$0xff]  ;;  %v2505_v40 = vld [vmem:[#allocation29_spill] sm:$0xff] }
 0x179   : > { %v1583_v36 = vpop.eup %1582  ;;  %1594 = vpow2.f32 %v988_v7  ;;  %v819_v23 = vsub.f32 %v2497_v11, %v2164_v22  ;;  %v956_v30 = vmul.f32 1.442695, %v850_v24  ;;  %v952_v0 = vmul.f32 1.442695, %v848_v16  ;;  %v2500_v24 = vld [vmem:[#allocation10_spill] sm:$0xff] }
 0x17a   : > { %1041 = vmatpush.msrb.mxu2 %v1571_v39  ;;  %v1585_v17 = vpop.eup %1584  ;;  %1596 = vpow2.f32 %v930_v14  ;;  %v856_v39 = vsub.f32 %v2032_v4, %v2159_v9  ;;  %v825_v4 = vsub.f32 %v1998_v51, %v2164_v22  ;;  %v948_v45 = vmul.f32 1.442695, %v846_v26 }
 0x17b   : > { %v1587_v60 = vpop.eup %1586  ;;  %1598 = vpow2.f32 %v984_v3  ;;  %v898_v3 = vmul.f32 1.442695, %v821_v58  ;;  %v894_v12 = vmul.f32 1.442695, %v819_v23  ;;  %v811_v26 = vsub.f32 %v2504_v31, %v2164_v22 }
 0x17c   : > { %1042 = vmatpush.msrb.mxu2 %v1573_v62  ;;  %v1589_v2 = vpop.eup %1588  ;;  %v827_v62 = vsub.f32 %v2004_v54, %v2164_v22  ;;  %1600 = vpow2.f32 %v926_v34  ;;  %v968_v35 = vmul.f32 1.442695, %v856_v39  ;;  %v2499_v34 = vld [vmem:[#allocation26_spill] sm:$0xff] }
 0x17d   : > { %v1591_v59 = vpop.eup %1590  ;;  %1602 = vpow2.f32 %v980_v46  ;;  %v815_v46 = vsub.f32 %v2500_v24, %v2164_v22 }
 0x17e   : > { %1043 = vmatpush.msrb.mxu2 %v1575_v38  ;;  %v1593_v38 = vpop.eup %1592  ;;  %1604 = vpow2.f32 %v922_v6  ;;  %1068 = vmatpush.msrb.mxu3 %v1591_v59  ;;  %v910_v32 = vmul.f32 1.442695, %v827_v62  ;;  %v2503_v59 = vld [vmem:[#allocation20_spill] sm:$0xff] }
 0x17f   : > { %v1595_v54 = vpop.eup %1594  ;;  %1606 = vpow2.f32 %v976_v44  ;;  %v2502_v44 = vld [vmem:[#allocation9_spill] sm:$0xff]  ;;  %v840_v57 = vsub.f32 %v2503_v59, %v2159_v9 }
 0x180   : > { %1044 = vmatpush.msrb.mxu2 %v1577_v42  ;;  %v1597_v42 = vpop.eup %1596  ;;  %1608 = vpow2.f32 %v918_v8  ;;  %1069 = vmatpush.msrb.mxu3 %v1595_v54 }
 0x181   : > { %v1599_v51 = vpop.eup %1598  ;;  %1610 = vpow2.f32 %v972_v20  ;;  %v936_v58 = vmul.f32 1.442695, %v840_v57  ;;  %v2513_v57 = vld [vmem:[#allocation17_spill] sm:$0xff] }
 0x182   : > { %1045 = vmatpush.msrb.mxu2 %v1579_v50  ;;  %v1601_v28 = vpop.eup %1600  ;;  %v906_v50 = vmul.f32 1.442695, %v825_v4  ;;  %1612 = vpow2.f32 %v914_v33  ;;  %1070 = vmatpush.msrb.mxu3 %v1599_v51  ;;  %v886_v4 = vmul.f32 1.442695, %v815_v46  ;;  %v2300_v33 = vld [vmem:[%s2246_s21 + $0x20] sm:$0xff] }
 0x183   : > { %v1603_v61 = vpop.eup %1602  ;;  %1614 = vpow2.f32 %v968_v35  ;;  %v871_v35 = vsub.f32 %v2505_v40, %v2164_v22 }
 0x184   : > { %1046 = vmatpush.msrb.mxu2 %v1581_v21  ;;  %v1605_v49 = vpop.eup %1604  ;;  %v902_v21 = vmul.f32 1.442695, %v823_v63  ;;  %1616 = vpow2.f32 %v910_v32  ;;  %1071 = vmatpush.msrb.mxu3 %v1603_v61  ;;  %v878_v61 = vmul.f32 1.442695, %v811_v26  ;;  %v2330_v26 = vld [vmem:[%s2246_s21 + $0x40] sm:$0x1] }
 0x185   : > { %v1607_v7 = vpop.eup %1606  ;;  %1618 = vpow2.f32 %v964_v52  ;;  %v998_v23 = vmul.f32 1.442695, %v871_v35 }
 0x186   : > { %1047 = vmatpush.msrb.mxu2 %v1583_v36  ;;  %v1609_v14 = vpop.eup %1608  ;;  %v2498_v36 = vld [vmem:[#allocation11_spill] sm:$0xff]  ;;  %1620 = vpow2.f32 %v906_v50  ;;  %1072 = vmatpush.msrb.mxu3 %v1607_v7 }
 0x187   : > { %v817_v48 = vsub.f32 %v2498_v36, %v2164_v22  ;;  %v1611_v25 = vpop.eup %1610  ;;  %1622 = vpow2.f32 %v960_v19 }
 0x188   : > { %1048 = vmatpush.msrb.mxu2 %v1585_v17  ;;  %v844_v17 = vsub.f32 %v2499_v34, %v2159_v9  ;;  %v1613_v5 = vpop.eup %1612  ;;  %1624 = vpow2.f32 %v902_v21  ;;  %1073 = vmatpush.msrb.mxu3 %v1611_v25  ;;  %v2314_v25 = vld [vmem:[%s2246_s21 + $0x30] sm:$0xff] }
 0x189   : > { %v1615_v6 = vpop.eup %1614  ;;  %1626 = vpow2.f32 %v956_v30  ;;  %v890_v62 = vmul.f32 1.442695, %v817_v48 }
 0x18a   : > { %1049 = vmatpush.msrb.mxu2 %v1587_v60  ;;  %v2501_v60 = vld [vmem:[#allocation23_spill] sm:$0xff]  ;;  %v1617_v16 = vpop.eup %1616  ;;  %1628 = vpow2.f32 %v898_v3  ;;  %1074 = vmatpush.msrb.mxu3 %v1615_v6  ;;  %v944_v20 = vmul.f32 1.442695, %v844_v17  ;;  %v2510_v17 = vld [vmem:[#allocation22_spill] sm:$0xff] }
 0x18b   : > { %v842_v39 = vsub.f32 %v2501_v60, %v2159_v9  ;;  %v1619_v8 = vpop.eup %1618  ;;  %1630 = vpow2.f32 %v952_v0  ;;  %v2506_v9 = vld [vmem:[#allocation7_spill] sm:$0xff]  ;;  %v863_v0 = vsub.f32 %v2510_v17, %v2164_v22 }
 0x18c   : > { %1050 = vmatpush.msrb.mxu2 %v1589_v2  ;;  %v813_v2 = vsub.f32 %v2502_v44, %v2164_v22  ;;  %1632 = vpow2.f32 %v894_v12  ;;  %1075 = vmatpush.msrb.mxu3 %v1619_v8  ;;  %v809_v32 = vsub.f32 %v2506_v9, %v2164_v22  ;;  %v2511_v12 = vld [vmem:[#allocation19_spill] sm:$0xff]  ;;  %v2512_v44 = vld [vmem:[#allocation18_spill] sm:$0xff] }
 0x18d   : > { %1051 = vmatmul.f32.vlgmr.msrb.gmra.mxu2 %v2257_v41  ;;  %1634 = vpow2.f32 %v948_v45  ;;  %v861_v6 = vsub.f32 %v2511_v12, %v2164_v22  ;;  %v2322_v45 = vld [vmem:[%s2246_s21 + $0x8] sm:$0xff]  ;;  %v1032_v17 = vld [vmem:[%s2246_s21 + $0x38] sm:$0xff] }
 0x18e   : > { %1099 = vmatpush.msra.mxu2 %v1593_v38  ;;  %v1621_v38 = vpop.eup %1620  ;;  %v882_v51 = vmul.f32 1.442695, %v813_v2  ;;  %1636 = vpow2.f32 %v890_v62  ;;  %v874_v7 = vmul.f32 1.442695, %v809_v32  ;;  %v859_v2 = vsub.f32 %v2512_v44, %v2164_v22 }
 0x18f   : > { %v1623_v54 = vpop.eup %1622  ;;  %1638 = vpow2.f32 %v944_v20  ;;  %v982_v62 = vmul.f32 1.442695, %v863_v0  ;;  %v857_v20 = vsub.f32 %v2513_v57, %v2164_v22 }
 0x190   : > { %1100 = vmatpush.msra.mxu2 %v1597_v42  ;;  %v940_v42 = vmul.f32 1.442695, %v842_v39  ;;  %v1625_v63 = vpop.eup %1624  ;;  %1076 = vmatpush.msrb.mxu3 %v1623_v54  ;;  %1640 = vpow2.f32 %v886_v4  ;;  %v2514_v54 = vld [vmem:[#allocation16_spill] sm:$0xff]  ;;  %v974_v35 = vmul.f32 1.442695, %v859_v2 }
 0x191   : > { %v1627_v52 = vpop.eup %1626  ;;  %v855_v40 = vsub.f32 %v2514_v54, %v2164_v22  ;;  %v970_v32 = vmul.f32 1.442695, %v857_v20 }
 0x192   : > { %1101 = vmatpush.msra.mxu2 %v1601_v28  ;;  %v2507_v28 = vld [vmem:[#allocation28_spill] sm:$0xff]  ;;  %v1629_v50 = vpop.eup %1628  ;;  %1077 = vmatpush.msrb.mxu3 %v1627_v52  ;;  %1642 = vpow2.f32 %v940_v42 }
 0x193   : > { %v869_v43 = vsub.f32 %v2507_v28, %v2164_v22  ;;  %v1631_v19 = vpop.eup %1630  ;;  %1644 = vpow2.f32 %v882_v51  ;;  %v1028_v51 = vld [vmem:[%s2246_s21 + $0x18] sm:$0xff]  ;;  %v2516_v28 = vld [vmem:[#allocation14_spill] sm:$0xff] }
 0x194   : > { %1102 = vmatpush.msra.mxu2 %v1605_v49  ;;  %v2508_v49 = vld [vmem:[#allocation27_spill] sm:$0xff]  ;;  %v1633_v21 = vpop.eup %1632  ;;  %1078 = vmatpush.msrb.mxu3 %v1631_v19  ;;  %1646 = vpow2.f32 %v936_v58  ;;  %v966_v58 = vmul.f32 1.442695, %v855_v40 }
 0x195   : > { %1054 = vmatmul.f32.gmra.mxu2 %v2273_v18  ;;  %v867_v11 = vsub.f32 %v2508_v49, %v2164_v22  ;;  %v1635_v30 = vpop.eup %1634  ;;  %v994_v48 = vmul.f32 1.442695, %v869_v43  ;;  %1648 = vpow2.f32 %v878_v61  ;;  %v851_v43 = vsub.f32 %v2516_v28, %v2164_v22 }
 0x196   : > { %1103 = vmatpush.msra.mxu2 %v1609_v14  ;;  %v2509_v14 = vld [vmem:[#allocation25_spill] sm:$0xff]  ;;  %v1637_v3 = vpop.eup %1636  ;;  %1079 = vmatpush.msrb.mxu3 %v1635_v30  ;;  %1650 = vpow2.f32 %v998_v23  ;;  %v954_v23 = vmul.f32 1.442695, %v849_v15  ;;  %v2517_v30 = vld [vmem:[#allocation24_spill] sm:$0xff]  ;;  %v841_v15 = vsub.f32 %v2518_v13, %v2164_v22 }
 0x197   : > { %v865_v36 = vsub.f32 %v2509_v14, %v2164_v22  ;;  %v1639_v34 = vpop.eup %1638  ;;  %1652 = vpow2.f32 %v874_v7  ;;  %v958_v49 = vmul.f32 1.442695, %v851_v43  ;;  %v843_v14 = vsub.f32 %v2517_v30, %v2164_v22 }
 0x198   : > { %1104 = vmatpush.msra.mxu2 %v1613_v5  ;;  %v990_v5 = vmul.f32 1.442695, %v867_v11  ;;  %v1641_v24 = vpop.eup %1640  ;;  %1080 = vmatpush.msrb.mxu3 %v1639_v34  ;;  %1654 = vpow2.f32 %v994_v48 }
 0x199   : > { %v1643_v46 = vpop.eup %1642  ;;  %v986_v60 = vmul.f32 1.442695, %v865_v36  ;;  %v950_v36 = vmul.f32 1.442695, %v847_v47  ;;  %v942_v34 = vmul.f32 1.442695, %v843_v14 }
 0x19a   : > { %1105 = vmatpush.msra.mxu2 %v1617_v16  ;;  %v1645_v39 = vpop.eup %1644  ;;  %1081 = vmatpush.msrb.mxu3 %v1643_v46  ;;  %1656 = vpow2.f32 %v990_v5  ;;  %v938_v47 = vmul.f32 1.442695, %v841_v15  ;;  %v1034_v5 = vld [vmem:[%s2246_s21 + $0x48] sm:$0x1] }
 0x19b   : > { %v1647_v16 = vpop.eup %1646  ;;  %1658 = vpow2.f32 %v986_v60 }
 0x19c   : > { %1106 = vmatpush.msra.mxu2 %v1621_v38  ;;  %v1649_v8 = vpop.eup %1648  ;;  %1082 = vmatpush.msrb.mxu3 %v1647_v16  ;;  %v978_v38 = vmul.f32 1.442695, %v861_v6  ;;  %1660 = vpow2.f32 %v982_v62 }
 0x19d   : > { %1057 = vmatmul.f32.gmra.mxu2 %v2300_v33  ;;  %v1651_v59 = vpop.eup %1650  ;;  %1083 = vmatmul.f32.vlgmr.msrb.gmra.mxu3 %v2322_v45 }
 0x19e   : > { %1107 = vmatpush.msra.mxu2 %v1625_v63  ;;  %v1653_v31 = vpop.eup %1652  ;;  %1131 = vmatpush.msra.mxu3 %v1651_v59  ;;  %v2515_v63 = vld [vmem:[#allocation15_spill] sm:$0xff]  ;;  %1662 = vpow2.f32 %v978_v38  ;;  %v1008_v38 = vld [vmem:[#allocation3 + $0x40] sm:$0x1] }
 0x19f   : > { %v1655_v4 = vpop.eup %1654  ;;  %v853_v9 = vsub.f32 %v2515_v63, %v2164_v22  ;;  %1664 = vpow2.f32 %v974_v35 }
 0x1a0   : > { %1108 = vmatpush.msra.mxu2 %v1629_v50  ;;  %1132 = vmatpush.msra.mxu3 %v1655_v4  ;;  %v1657_v42 = vpop.eup %1656  ;;  %1666 = vpow2.f32 %v970_v32  ;;  %v1023_v4 = vmul.f32 %v1011_v1, %v1008_v38 }
 0x1a1   : > { %v1659_v52 = vpop.eup %1658  ;;  %v962_v61 = vmul.f32 1.442695, %v853_v9  ;;  %1668 = vpow2.f32 %v966_v58 }
 0x1a2   : > { %1109 = vmatpush.msra.mxu2 %v1633_v21  ;;  %1133 = vmatpush.msra.mxu3 %v1657_v42  ;;  %v1661_v50 = vpop.eup %1660  ;;  %v1030_v21 = vld [vmem:[%s2246_s21 + $0x28] sm:$0xff] }
 0x1a3   : > { %1670 = vpow2.f32 %v962_v61 }
 0x1a4   : > { %1110 = vmatpush.msra.mxu2 %v1637_v3  ;;  %1134 = vmatpush.msra.mxu3 %v1659_v52  ;;  %v1663_v19 = vpop.eup %1662  ;;  %1672 = vpow2.f32 %v958_v49 }
 0x1a5   : > { %1060 = vmatmul.f32.gmra.mxu2 %v2314_v25  ;;  %1086 = vmatmul.f32.gmra.mxu3 %v1028_v51  ;;  %v1665_v11 = vpop.eup %1664  ;;  %1674 = vpow2.f32 %v954_v23 }
 0x1a6   : > { %1111 = vmatpush.msra.mxu2 %v1641_v24  ;;  %1135 = vmatpush.msra.mxu3 %v1661_v50  ;;  %v1667_v7 = vpop.eup %1666  ;;  %1676 = vpow2.f32 %v950_v36 }
 0x1a7   : > { %v1669_v48 = vpop.eup %1668 }
 0x1a8   : > { %1112 = vmatpush.msra.mxu2 %v1645_v39  ;;  %1136 = vmatpush.msra.mxu3 %v1663_v19 }
 0x1a9   : > { %v1671_v3 = vpop.eup %1670 }
 0x1aa   : > { %1113 = vmatpush.msra.mxu2 %v1649_v8  ;;  %1137 = vmatpush.msra.mxu3 %v1665_v11  ;;  %v1673_v37 = vpop.eup %1672  ;;  %v1009_v11 = vld [vmem:[#allocation3 + $0x48] sm:$0x1] }
 0x1ab   : > { %v1675_v0 = vpop.eup %1674 }
 0x1ac   : > { %1114 = vmatpush.msra.mxu2 %v1653_v31  ;;  %1138 = vmatpush.msra.mxu3 %v1667_v7  ;;  %v1677_v29 = vpop.eup %1676 }
 0x1ad   : > { %1063 = vmatmul.f32.gmra.mxu2 %v2330_v26  ;;  %1089 = vmatmul.f32.gmra.mxu3 %v1030_v21 }
 0x1ae   : > { %1139 = vmatpush.msra.mxu3 %v1669_v48 }
 0x1b0   : > { %1140 = vmatpush.msra.mxu3 %v1671_v3 }
 0x1b2   : > { %1141 = vmatpush.msra.mxu3 %v1673_v37  ;;  %v1228_v37 = vld [vmem:[%s2386_s30] sm:$0xff] }
 0x1b4   : > { %1142 = vmatpush.msra.mxu3 %v1675_v0  ;;  %v1229_v0 = vld [vmem:[%s2386_s30 + $0x8] sm:$0xff] }
 0x1b5   : > { %1115 = vmatmul.f32.vlgmr.msra.gmra.mxu2 %v2257_v41  ;;  %v946_v41 = vmul.f32 1.442695, %v845_v27  ;;  %1092 = vmatmul.f32.gmra.mxu3 %v1032_v17 }
 0x1b6   : > { %1143 = vmatpush.msra.mxu3 %v1677_v29  ;;  %v1230_v29 = vld [vmem:[%s2386_s30 + $0x10] sm:$0xff] }
 0x1b7   : > { %1678 = vpow2.f32 %v946_v41 }
 0x1b8   : > { %1680 = vpow2.f32 %v942_v34 }
 0x1b9   : > { %1682 = vpow2.f32 %v938_v47 }
 0x1bd   : > { %1118 = vmatmul.f32.gmra.mxu2 %v2273_v18  ;;  %v1679_v22 = vpop.eup %1678  ;;  %1095 = vmatmul.f32.gmra.mxu3 %v1034_v5 }
 0x1be   : > { %1144 = vmatpush.msra.mxu3 %v1679_v22  ;;  %v1681_v27 = vpop.eup %1680  ;;  %v1231_v22 = vld [vmem:[%s2386_s30 + $0x18] sm:$0xff] }
 0x1bf   : > { %v1683_v24 = vpop.eup %1682 }
 0x1c0   : > { %1145 = vmatpush.msra.mxu3 %v1681_v27  ;;  %v1233_v27 = vld [vmem:[%s2386_s30 + $0x28] sm:$0xff] }
 0x1c2   : > { %1146 = vmatpush.msra.mxu3 %v1683_v24 }
 0x1c5   : > { %1121 = vmatmul.f32.gmra.mxu2 %v2300_v33  ;;  %1147 = vmatmul.f32.vlgmr.msra.gmra.mxu3 %v2322_v45 }
 0x1cd   : > { %1124 = vmatmul.f32.gmra.mxu2 %v2314_v25  ;;  %1150 = vmatmul.f32.gmra.mxu3 %v1028_v51 }
 0x1d5   : > { %1127 = vmatmul.f32.gmra.mxu2 %v2330_v26  ;;  %1153 = vmatmul.f32.gmra.mxu3 %v1030_v21  ;;  %v1024_v21 = vmul.f32 %v1012_v55, %v1009_v11 }
 0x1dd   : > { %1156 = vmatmul.f32.gmra.mxu3 %v1032_v17 }
 0x1e5   : > { %1159 = vmatmul.f32.gmra.mxu3 %v1034_v5  ;;  %v1235_v5 = vld [vmem:[%s2386_s30 + $0x38] sm:$0xff] }
 0x210   : > { %v1052_v18 = vpop.f32.mrf.mxu2 }
 0x218   : > { %v1055_v46 = vpop.f32.mrf.mxu2 }
 0x220   : > { %v1084_v12 = vpop.f32.mrf.mxu3  ;;  %v1058_v6 = vpop.f32.mrf.mxu2 }
 0x221   : > { %v1085_v33 = vadd.f32 %v1084_v12, %v1052_v18 }
 0x223   : > { %v2363_v60 = vadd.f32 %v1085_v33, %v2200_v56 }
 0x228   : > { %v1087_v39 = vpop.f32.mrf.mxu3  ;;  %v1061_v44 = vpop.f32.mrf.mxu2 }
 0x229   : > { %v1088_v16 = vadd.f32 %v1087_v39, %v1055_v46 }
 0x22b   : > { %v2366_v25 = vadd.f32 %v1088_v16, %v2200_v56 }
 0x230   : > { %v1090_v45 = vpop.f32.mrf.mxu3  ;;  %v1064_v8 = vpop.f32.mrf.mxu2 }
 0x231   : > { %v1091_v2 = vadd.f32 %v1090_v45, %v1058_v6  ;;  %v1232_v6 = vld [vmem:[%s2386_s30 + $0x20] sm:$0xff] }
 0x233   : > { %v2369_v62 = vadd.f32 %v1091_v2, %v2200_v56 }
 0x238   : > { %v1093_v59 = vpop.f32.mrf.mxu3  ;;  %v1116_v31 = vpop.f32.mrf.mxu2 }
 0x239   : > { %v1094_v57 = vadd.f32 %v1093_v59, %v1061_v44 }
 0x23b   : > { %v2372_v20 = vadd.f32 %v1094_v57, %v2200_v56 }
 0x240   : > { %v1096_v26 = vpop.f32.mrf.mxu3  ;;  %v1119_v42 = vpop.f32.mrf.mxu2 }
 0x241   : > { %v1097_v54 = vadd.f32 %v1096_v26, %v1064_v8 }
 0x243   : > { %v1171_v40 = vadd.f32 %v1097_v54, %v1023_v4 }
 0x245   : > { %1181 = vst [vmem:[#allocation3 + $0x40] sm:$0x1] %v1171_v40 }
 0x248   : > { %v1148_v35 = vpop.f32.mrf.mxu3  ;;  %v1122_v52 = vpop.f32.mrf.mxu2 }
 0x249   : > { %v1149_v63 = vadd.f32 %v1148_v35, %v1116_v31 }
 0x24b   : > { %v1164_v9 = vadd.f32 %v1149_v63, %v2204_v53 }
 0x250   : > { %v1151_v32 = vpop.f32.mrf.mxu3  ;;  %v1125_v50 = vpop.f32.mrf.mxu2 }
 0x251   : > { %v1152_v51 = vadd.f32 %v1151_v32, %v1119_v42 }
 0x253   : > { %v1166_v56 = vadd.f32 %v1152_v51, %v2204_v53 }
 0x258   : > { %v1154_v28 = vpop.f32.mrf.mxu3  ;;  %v1128_v49 = vpop.f32.mrf.mxu2 }
 0x259   : > { %v1155_v43 = vadd.f32 %v1154_v28, %v1122_v52 }
 0x25b   : > { %v1168_v58 = vadd.f32 %v1155_v43, %v2204_v53 }
 0x260   : > { %v1157_v61 = vpop.f32.mrf.mxu3 }
 0x261   : > { %v1158_v1 = vadd.f32 %v1157_v61, %v1125_v50 }
 0x263   : > { %v1170_v19 = vadd.f32 %v1158_v1, %v2204_v53 }
 0x268   : > { %v1160_v23 = vpop.f32.mrf.mxu3 }
 0x269   : > { %v1161_v7 = vadd.f32 %v1160_v23, %v1128_v49 }
 0x26b   : > { %v1172_v30 = vadd.f32 %v1161_v7, %v1024_v21 }
 0x26d   : > { %1182 = vst [vmem:[#allocation3 + $0x48] sm:$0x1] %v1172_v30 }
 0x274   : > { %v1192_v14 = vld [vmem:[#allocation3 + $0x40] ss:$8 sm:$0x3] }
 0x275   : > { %1684 = vrcp.f32 %v1192_v14  ;;  %v1204_v15 = vand.u32 2147483648, %v1192_v14  ;;  %v1202_v53 = vand.u32 2147483647, %v1192_v14  ;;  %vm1198_vm4 = vweird.f32 %v1192_v14 }
 0x277   : > { %v1205_v10 = vor.u32 1.1754944e-38, %v1204_v15  ;;  %vm1203_vm6 = vcmp.eq.f32.partialorder %v1202_v53, 8.507059e+37 }
 0x27b   : > { %v1685_v36 = vpop.eup %1684 }
 0x27c   : > { %v1194_v48 = vmul.f32 %v1685_v36, %v1192_v14  ;;  %vm1199_vm3 = vweird.f32 %v1685_v36 }
 0x27d   : > { %vm1200_vm5 = vmor %vm1198_vm4, %vm1199_vm3 }
 0x27e   : > { %v1195_v13 = vsub.f32 1.0, %v1194_v48 }
 0x280   : > { %v1196_v41 = vmul.f32 %v1685_v36, %v1195_v13 }
 0x282   : > { %v1197_v3 = vadd.f32 %v1685_v36, %v1196_v41 }
 0x284   : > { %v1201_v55 = vsel %vm1200_vm5, %v1685_v36, %v1197_v3 }
 0x285   : > { %v1206_v34 = vsel %vm1203_vm6, %v1205_v10, %v1201_v55 }
 0x286   : > { %v1216_v47 = vperm.slane %v1206_v34, 0  ;;  %v1217_v17 = vperm.slane %v1206_v34, 1 }
 0x288   : > { %v1220_v24 = vmul.f32 %v1216_v47, %v2363_v60  ;;  %v1221_v18 = vmul.f32 %v1217_v17, %v1164_v9  ;;  %v1222_v46 = vmul.f32 %v1216_v47, %v2366_v25  ;;  %v1223_v12 = vmul.f32 %v1217_v17, %v1166_v56  ;;  %v1234_v60 = vld [vmem:[%s2386_s30 + $0x30] sm:$0xff] }
 0x289   : > { %v1224_v33 = vmul.f32 %v1216_v47, %v2369_v62  ;;  %v1225_v39 = vmul.f32 %v1217_v17, %v1168_v58  ;;  %v1226_v16 = vmul.f32 %v1216_v47, %v2372_v20  ;;  %v1227_v44 = vmul.f32 %v1217_v17, %v1170_v19 }
 0x28a   : > { %v1236_v45 = vadd.f32 %v1228_v37, %v1220_v24  ;;  %v1237_v2 = vadd.f32 %v1229_v0, %v1221_v18  ;;  %v1238_v8 = vadd.f32 %v1230_v29, %v1222_v46  ;;  %v1239_v59 = vadd.f32 %v1231_v22, %v1223_v12 }
 0x28b   : > { %v1241_v57 = vadd.f32 %v1233_v27, %v1225_v39  ;;  %v1243_v38 = vadd.f32 %v1235_v5, %v1227_v44  ;;  %v1240_v25 = vadd.f32 %v1232_v6, %v1224_v33  ;;  %v1242_v62 = vadd.f32 %v1234_v60, %v1226_v16 }
 0x28c   : > { %1244 = vst [vmem:[%s300_s9] sm:$0xff] %v1236_v45 }
 0x28d   : > { %1245 = vst [vmem:[%s300_s9 + $0x8] sm:$0xff] %v1237_v2 }
 0x28e   : > { %1246 = vst [vmem:[%s300_s9 + $0x10] sm:$0xff] %v1238_v8 }
 0x28f   : > { %1247 = vst [vmem:[%s300_s9 + $0x18] sm:$0xff] %v1239_v59 }
 0x290   : > { %1248 = vst [vmem:[%s300_s9 + $0x20] sm:$0xff] %v1240_v25 }
 0x291   : > { %1249 = vst [vmem:[%s300_s9 + $0x28] sm:$0xff] %v1241_v57 }
 0x292   : > { %1250 = vst [vmem:[%s300_s9 + $0x30] sm:$0xff] %v1242_v62 }
 0x293   : > { %1251 = vst [vmem:[%s300_s9 + $0x38] sm:$0xff] %v1243_v38 }
 0x294   : > { %1713 = shalt.err (!%p1710_p5)
}
 0x295   : > { %s1768_s29 = smov 256   ;;  %s1769_s5 = smov 16  }
 0x296   : > { %1495 = dma.vmem_to_hbm [thread:$0]  (%p1835_p4), %s1268_s10, 1024, %s1270_s11, %s1253_s12, %s1768_s29, %s1768_s29, %s1769_s5  }
 0x297 PF: > { %p1501_p6 = scmp.ge.s32.totalorder %s1764_s20, 2  ;;  %s1284_s6 = sand.u32 1, %s1744_s15  }
 0x298   : > { %s1285_s18 = scalar_lea.sflag [#allocation5], %s1284_s6 }
 0x299   : > { %p1498_p7 = pnand %p1501_p6, %p1842_p8 }
 0x29b   : > { %p1499_p9 = pneg %p1498_p7 }
 0x29d   : > { %1739 = dma.done.wait (%p1499_p9), %s1285_s18, 1024  }
 0x29e   : > { %1741 = vsyncadd (%p1499_p9), %s1285_s18, 4294966272  ;;  %s17_s20 = sadd.s32 1, %s1764_s20   ;;  %s2519_s15 = smov %s1748_s16 }
 0x29f   : > { %p14_p10 = scmp.ge.s32.totalorder %s17_s20, 4   ;;  %s2520_s16 = smov %s1752_s17 }
 0x2a0   : > { %s2521_s17 = smov %s1848_s28  ;;  %s2522_s18 = smov %s1760_s19 }
 0x2a1   : > { %s2523_s19 = smov %s2525_s23  ;;  %16 = sbr.rel (!%p14_p10) target bundleno = 4 (0x4), region = 89 }
 0x2a6   :  { %1291 = vsyncpa [#allocation5], 1 }
 0x2a7   :  { %1293 = vsyncpa [#allocation5 + $0x1], 1 }

</bundles_post_ra>
